<compile_context>
chip_gen: v6e
topology: v6e:2x2x1
jax: 0.10.0
libtpu: 0.0.40
codegen_flags: <defaults>
</compile_context>

<pallas_src>
import functools

import jax
import jax.numpy as jnp
from jax.experimental import pallas as pl
from jax.experimental.pallas import tpu as pltpu

_LANE = 128


def _gaussian_loss_kernel(t_ref, s_ref, o_ref,
                          acc_t, acc_tt, acc_s, acc_ss,
                          *, hw, hw_tile, lane_folds, mask_cols):
    j = pl.program_id(1)

    @pl.when(j == 0)
    def _():
        acc_t[...] = jnp.zeros_like(acc_t)
        acc_tt[...] = jnp.zeros_like(acc_tt)
        acc_s[...] = jnp.zeros_like(acc_s)
        acc_ss[...] = jnp.zeros_like(acc_ss)

    t = t_ref[...].astype(jnp.float32)          # (tr, hw_tile)
    s = s_ref[...].astype(jnp.float32)          # (tr, hw_tile)

    if mask_cols:
        # Ragged spatial tail: out-of-bounds lanes of the boundary block hold
        # garbage (inputs are NOT padded in HBM); zero them before use.
        col = jax.lax.broadcasted_iota(jnp.int32, t.shape, 1)
        valid = col < (hw - j * hw_tile)
        t = jnp.where(valid, t, 0.0)
        s = jnp.where(valid, s, 0.0)

    # Lane-dense accumulation: fold columns 128 at a time with VPU adds into
    # (tr, 128) accumulators (static, vreg-aligned slices -> no relayout).
    st, stt = acc_t[...], acc_tt[...]
    ss_, sss = acc_s[...], acc_ss[...]
    for c in range(lane_folds):
        tc = t[:, c * _LANE:(c + 1) * _LANE]
        sc = s[:, c * _LANE:(c + 1) * _LANE]
        st = st + tc
        stt = stt + tc * tc
        ss_ = ss_ + sc
        sss = sss + sc * sc
    acc_t[...], acc_tt[...] = st, stt
    acc_s[...], acc_ss[...] = ss_, sss

    @pl.when(j == pl.num_programs(1) - 1)
    def _():
        inv_hw = jnp.float32(1.0 / hw)
        # Single cross-lane collapse per row block (once, not per tile).
        sum_t = jnp.sum(st, axis=1, keepdims=True)
        sum_tt = jnp.sum(stt, axis=1, keepdims=True)
        sum_s = jnp.sum(ss_, axis=1, keepdims=True)
        sum_ss = jnp.sum(sss, axis=1, keepdims=True)
        t_mean = sum_t * inv_hw
        s_mean = sum_s * inv_hw
        # One-pass biased variance; reference's +epsilon cancels in the diff.
        t_var = sum_tt * inv_hw - t_mean * t_mean
        s_var = sum_ss * inv_hw - s_mean * s_mean
        dm = t_mean - s_mean
        dv = t_var - s_var
        o_ref[...] = dm * dm + dv * dv          # per-row partial loss


def gaussian_loss(teacher_feat, student_feat, epsilon=1e-8):
    # teacher_feat, student_feat: (N, C, H, W), same shape/dtype.
    # `epsilon` kept for API compatibility; it cancels exactly in the loss.
    del epsilon
    assert teacher_feat.shape == student_feat.shape
    assert teacher_feat.dtype == student_feat.dtype
    N, C, H, W = teacher_feat.shape
    rows, hw = N * C, H * W

    t2 = teacher_feat.reshape(rows, hw)
    s2 = student_feat.reshape(rows, hw)

    itemsize = jnp.dtype(t2.dtype).itemsize
    row_mult = {4: 8, 2: 16, 1: 32}.get(itemsize, 8)   # sublane packing

    # ---- Tiling -----------------------------------------------------------
    target_block_bytes = 4 * 1024 * 1024   # >= ~4 MiB per input per grid step
    max_hw_tile = 4096                     # caps in-kernel unroll (<=32 folds)
    tr_cap = 4096                          # caps accumulator scratch at 8 MiB

    hw128 = pl.cdiv(hw, _LANE) * _LANE     # lane-padded row width
    hw_tile = min(hw128, max_hw_tile)
    rows_up = pl.cdiv(rows, row_mult) * row_mult

    tr = max(1, target_block_bytes // (hw_tile * itemsize))
    tr = min(tr, tr_cap, rows_up)
    tr = max(row_mult, (tr // row_mult) * row_mult)

    # v7x megacore: ensure >= 2 blocks on the parallel row axis when possible
    # so both TensorCores stream HBM (one extra ~0.35us step elsewhere).
    if pl.cdiv(rows, tr) < 2 and rows > row_mult:
        tr = pl.cdiv(pl.cdiv(rows, 2), row_mult) * row_mult

    grid = (pl.cdiv(rows, tr), pl.cdiv(hw, hw_tile))
    lane_folds = hw_tile // _LANE
    mask_cols = (hw % hw_tile) != 0

    # ---- VMEM budget: 2 inputs x 2 pipeline buffers + accumulators + output.
    block_bytes = tr * hw_tile * itemsize
    vmem_est = 2 * 2 * block_bytes + 4 * tr * _LANE * 4 + 2 * tr * 4
    vmem_limit = int(min(max(vmem_est + (4 << 20), 32 << 20), 48 << 20))

    kernel = functools.partial(_gaussian_loss_kernel, hw=hw, hw_tile=hw_tile,
                               lane_folds=lane_folds, mask_cols=mask_cols)

    cost = pl.CostEstimate(
        flops=4 * rows * hw + 16 * rows,
        transcendentals=0,
        bytes_accessed=2 * rows * hw * itemsize + rows * 4,
    )

    partials = pl.pallas_call(
        kernel,
        out_shape=jax.ShapeDtypeStruct((rows, 1), jnp.float32),
        grid_spec=pltpu.PrefetchScalarGridSpec(
            num_scalar_prefetch=0,
            grid=grid,
            in_specs=[
                pl.BlockSpec((tr, hw_tile), lambda i, j: (i, j)),
                pl.BlockSpec((tr, hw_tile), lambda i, j: (i, j)),
            ],
            out_specs=pl.BlockSpec((tr, 1), lambda i, j: (i, 0)),
            scratch_shapes=[pltpu.VMEM((tr, _LANE), jnp.float32)] * 4,
        ),
        compiler_params=pltpu.CompilerParams(
            dimension_semantics=("parallel", "arbitrary"),
            vmem_limit_bytes=vmem_limit,
        ),
        cost_estimate=cost,
    )(t2, s2)

    # Every valid row is written exactly once; normalize by the true N*C.
    return jnp.sum(partials) / jnp.float32(rows)


def gaussian_loss_ref(teacher_feat, student_feat, epsilon=1e-8):
    t_mean = teacher_feat.mean(axis=(2, 3), keepdims=True)
    s_mean = student_feat.mean(axis=(2, 3), keepdims=True)
    t_var = teacher_feat.var(axis=(2, 3), keepdims=True) + epsilon   # biased (ddof=0)
    s_var = student_feat.var(axis=(2, 3), keepdims=True) + epsilon
    mean_loss = jnp.mean((t_mean - s_mean) ** 2)
    var_loss = jnp.mean((t_var - s_var) ** 2)
    return mean_loss + var_loss


if __name__ == "__main__":
    key = jax.random.PRNGKey(0)

    # Case 1: aligned small shape (matches the module's typical use).
    k1, k2 = jax.random.split(key)
    N, C, H, W = 2, 4, 16, 16
    teacher = jax.random.normal(k1, (N, C, H, W), dtype=jnp.float32)
    student = jax.random.normal(k2, (N, C, H, W), dtype=jnp.float32) * 1.1 + 0.05

    loss = jax.block_until_ready(gaussian_loss(teacher, student))
    ref = jax.block_until_ready(gaussian_loss_ref(teacher, student))
    assert jnp.allclose(loss, ref, rtol=1e-5, atol=1e-6), (loss, ref)

    # Case 2: non-aligned shape exercising the ragged row/column masking path
    # (no jnp.pad — boundary blocks + in-kernel column mask).
    k3, k4 = jax.random.split(k1)
    t2 = jax.random.normal(k3, (3, 5, 7, 9), dtype=jnp.float32)
    s2 = jax.random.normal(k4, (3, 5, 7, 9), dtype=jnp.float32) * 0.9 - 0.1
    loss2 = jax.block_until_ready(gaussian_loss(t2, s2))
    ref2 = jax.block_until_ready(gaussian_loss_ref(t2, s2))
    assert jnp.allclose(loss2, ref2, rtol=1e-5, atol=1e-6), (loss2, ref2)

    print("KERNEL_OK")
</pallas_src>

<mosaic_0001>
module attributes {stable_mosaic.version = 11 : i64} {
  func.func @_gaussian_loss_kernel(%arg0: i32, %arg1: i32, %arg2: memref<8x256xf32, #tpu.memory_space<vmem>>, %arg3: memref<8x256xf32, #tpu.memory_space<vmem>>, %arg4: memref<8x1xf32, #tpu.memory_space<vmem>>, %arg5: memref<8x128xf32, #tpu.memory_space<vmem>>, %arg6: memref<8x128xf32, #tpu.memory_space<vmem>>, %arg7: memref<8x128xf32, #tpu.memory_space<vmem>>, %arg8: memref<8x128xf32, #tpu.memory_space<vmem>>) attributes {dimension_semantics = [#tpu.dimension_semantics<parallel>, #tpu.dimension_semantics<arbitrary>], iteration_bounds = array<i64: 1, 1>, scalar_prefetch = 0 : i64, scratch_operands = 4 : i64, tpu.core_type = #tpu.core_type<tc>, window_params = [{transform_indices = @transform_0, window_bounds = array<i64: 8, 256>}, {transform_indices = @transform_1, window_bounds = array<i64: 8, 256>}, {transform_indices = @transform_2, window_bounds = array<i64: 8, 1>}]} {
    %c0_i32 = arith.constant 0 : i32
    %0 = arith.cmpi eq, %arg1, %c0_i32 : i32
    %1 = arith.extui %0 : i1 to i32
    %c0_i32_0 = arith.constant 0 : i32
    %2 = arith.cmpi ne, %1, %c0_i32_0 : i32
    scf.if %2 {
      %cst = arith.constant 0.000000e+00 : f32
      %32 = vector.broadcast %cst : f32 to vector<8x128xf32>
      %c0_22 = arith.constant 0 : index
      %c0_23 = arith.constant 0 : index
      %33 = vector.load %arg5[%c0_22, %c0_23] : memref<8x128xf32, #tpu.memory_space<vmem>>, vector<8x128xf32>
      tpu.vector_store %arg5[%c0_22, %c0_23], %32 {strides = array<i32>} : memref<8x128xf32, #tpu.memory_space<vmem>>, vector<8x128xf32>,
      %cst_24 = arith.constant 0.000000e+00 : f32
      %34 = vector.broadcast %cst_24 : f32 to vector<8x128xf32>
      %c0_25 = arith.constant 0 : index
      %c0_26 = arith.constant 0 : index
      %35 = vector.load %arg6[%c0_25, %c0_26] : memref<8x128xf32, #tpu.memory_space<vmem>>, vector<8x128xf32>
      tpu.vector_store %arg6[%c0_25, %c0_26], %34 {strides = array<i32>} : memref<8x128xf32, #tpu.memory_space<vmem>>, vector<8x128xf32>,
      %cst_27 = arith.constant 0.000000e+00 : f32
      %36 = vector.broadcast %cst_27 : f32 to vector<8x128xf32>
      %c0_28 = arith.constant 0 : index
      %c0_29 = arith.constant 0 : index
      %37 = vector.load %arg7[%c0_28, %c0_29] : memref<8x128xf32, #tpu.memory_space<vmem>>, vector<8x128xf32>
      tpu.vector_store %arg7[%c0_28, %c0_29], %36 {strides = array<i32>} : memref<8x128xf32, #tpu.memory_space<vmem>>, vector<8x128xf32>,
      %cst_30 = arith.constant 0.000000e+00 : f32
      %38 = vector.broadcast %cst_30 : f32 to vector<8x128xf32>
      %c0_31 = arith.constant 0 : index
      %c0_32 = arith.constant 0 : index
      %39 = vector.load %arg8[%c0_31, %c0_32] : memref<8x128xf32, #tpu.memory_space<vmem>>, vector<8x128xf32>
      tpu.vector_store %arg8[%c0_31, %c0_32], %38 {strides = array<i32>} : memref<8x128xf32, #tpu.memory_space<vmem>>, vector<8x128xf32>,
    } else {
    }
    %c0 = arith.constant 0 : index
    %c0_1 = arith.constant 0 : index
    %3 = vector.load %arg2[%c0, %c0_1] : memref<8x256xf32, #tpu.memory_space<vmem>>, vector<8x256xf32>
    %c0_2 = arith.constant 0 : index
    %c0_3 = arith.constant 0 : index
    %4 = vector.load %arg3[%c0_2, %c0_3] : memref<8x256xf32, #tpu.memory_space<vmem>>, vector<8x256xf32>
    %c0_4 = arith.constant 0 : index
    %c0_5 = arith.constant 0 : index
    %5 = vector.load %arg5[%c0_4, %c0_5] : memref<8x128xf32, #tpu.memory_space<vmem>>, vector<8x128xf32>
    %c0_6 = arith.constant 0 : index
    %c0_7 = arith.constant 0 : index
    %6 = vector.load %arg6[%c0_6, %c0_7] : memref<8x128xf32, #tpu.memory_space<vmem>>, vector<8x128xf32>
    %c0_8 = arith.constant 0 : index
    %c0_9 = arith.constant 0 : index
    %7 = vector.load %arg7[%c0_8, %c0_9] : memref<8x128xf32, #tpu.memory_space<vmem>>, vector<8x128xf32>
    %c0_10 = arith.constant 0 : index
    %c0_11 = arith.constant 0 : index
    %8 = vector.load %arg8[%c0_10, %c0_11] : memref<8x128xf32, #tpu.memory_space<vmem>>, vector<8x128xf32>
    %9 = vector.extract_strided_slice %3 {offsets = [0, 0], sizes = [8, 128], strides = [1, 1]} : vector<8x256xf32> to vector<8x128xf32>
    %10 = vector.extract_strided_slice %4 {offsets = [0, 0], sizes = [8, 128], strides = [1, 1]} : vector<8x256xf32> to vector<8x128xf32>
    %11 = arith.addf %5, %9 : vector<8x128xf32>
    %12 = arith.mulf %9, %9 : vector<8x128xf32>
    %13 = arith.addf %6, %12 : vector<8x128xf32>
    %14 = arith.addf %7, %10 : vector<8x128xf32>
    %15 = arith.mulf %10, %10 : vector<8x128xf32>
    %16 = arith.addf %8, %15 : vector<8x128xf32>
    %17 = vector.extract_strided_slice %3 {offsets = [0, 128], sizes = [8, 128], strides = [1, 1]} : vector<8x256xf32> to vector<8x128xf32>
    %18 = vector.extract_strided_slice %4 {offsets = [0, 128], sizes = [8, 128], strides = [1, 1]} : vector<8x256xf32> to vector<8x128xf32>
    %19 = arith.addf %11, %17 : vector<8x128xf32>
    %20 = arith.mulf %17, %17 : vector<8x128xf32>
    %21 = arith.addf %13, %20 : vector<8x128xf32>
    %22 = arith.addf %14, %18 : vector<8x128xf32>
    %23 = arith.mulf %18, %18 : vector<8x128xf32>
    %24 = arith.addf %16, %23 : vector<8x128xf32>
    %c0_12 = arith.constant 0 : index
    %c0_13 = arith.constant 0 : index
    %25 = vector.load %arg5[%c0_12, %c0_13] : memref<8x128xf32, #tpu.memory_space<vmem>>, vector<8x128xf32>
    tpu.vector_store %arg5[%c0_12, %c0_13], %19 {strides = array<i32>} : memref<8x128xf32, #tpu.memory_space<vmem>>, vector<8x128xf32>,
    %c0_14 = arith.constant 0 : index
    %c0_15 = arith.constant 0 : index
    %26 = vector.load %arg6[%c0_14, %c0_15] : memref<8x128xf32, #tpu.memory_space<vmem>>, vector<8x128xf32>
    tpu.vector_store %arg6[%c0_14, %c0_15], %21 {strides = array<i32>} : memref<8x128xf32, #tpu.memory_space<vmem>>, vector<8x128xf32>,
    %c0_16 = arith.constant 0 : index
    %c0_17 = arith.constant 0 : index
    %27 = vector.load %arg7[%c0_16, %c0_17] : memref<8x128xf32, #tpu.memory_space<vmem>>, vector<8x128xf32>
    tpu.vector_store %arg7[%c0_16, %c0_17], %22 {strides = array<i32>} : memref<8x128xf32, #tpu.memory_space<vmem>>, vector<8x128xf32>,
    %c0_18 = arith.constant 0 : index
    %c0_19 = arith.constant 0 : index
    %28 = vector.load %arg8[%c0_18, %c0_19] : memref<8x128xf32, #tpu.memory_space<vmem>>, vector<8x128xf32>
    tpu.vector_store %arg8[%c0_18, %c0_19], %24 {strides = array<i32>} : memref<8x128xf32, #tpu.memory_space<vmem>>, vector<8x128xf32>,
    %c0_i32_20 = arith.constant 0 : i32
    %29 = arith.cmpi eq, %arg1, %c0_i32_20 : i32
    %30 = arith.extui %29 : i1 to i32
    %c0_i32_21 = arith.constant 0 : i32
    %31 = arith.cmpi ne, %30, %c0_i32_21 : i32
    scf.if %31 {
      %cst = arith.constant dense<0.000000e+00> : vector<8xf32>
      %32 = vector.multi_reduction <add>, %19, %cst [1] : vector<8x128xf32> to vector<8xf32>
      %33 = vector.shape_cast %32 : vector<8xf32> to vector<8x1xf32>
      %cst_22 = arith.constant dense<0.000000e+00> : vector<8xf32>
      %34 = vector.multi_reduction <add>, %21, %cst_22 [1] : vector<8x128xf32> to vector<8xf32>
      %35 = vector.shape_cast %34 : vector<8xf32> to vector<8x1xf32>
      %cst_23 = arith.constant dense<0.000000e+00> : vector<8xf32>
      %36 = vector.multi_reduction <add>, %22, %cst_23 [1] : vector<8x128xf32> to vector<8xf32>
      %37 = vector.shape_cast %36 : vector<8xf32> to vector<8x1xf32>
      %cst_24 = arith.constant dense<0.000000e+00> : vector<8xf32>
      %38 = vector.multi_reduction <add>, %24, %cst_24 [1] : vector<8x128xf32> to vector<8xf32>
      %39 = vector.shape_cast %38 : vector<8xf32> to vector<8x1xf32>
      %cst_25 = arith.constant 3.906250e-03 : f32
      %40 = vector.broadcast %cst_25 : f32 to vector<8x1xf32>
      %41 = arith.mulf %33, %40 : vector<8x1xf32>
      %cst_26 = arith.constant 3.906250e-03 : f32
      %42 = vector.broadcast %cst_26 : f32 to vector<8x1xf32>
      %43 = arith.mulf %37, %42 : vector<8x1xf32>
      %cst_27 = arith.constant 3.906250e-03 : f32
      %44 = vector.broadcast %cst_27 : f32 to vector<8x1xf32>
      %45 = arith.mulf %35, %44 : vector<8x1xf32>
      %46 = arith.mulf %41, %41 : vector<8x1xf32>
      %47 = arith.subf %45, %46 : vector<8x1xf32>
      %cst_28 = arith.constant 3.906250e-03 : f32
      %48 = vector.broadcast %cst_28 : f32 to vector<8x1xf32>
      %49 = arith.mulf %39, %48 : vector<8x1xf32>
      %50 = arith.mulf %43, %43 : vector<8x1xf32>
      %51 = arith.subf %49, %50 : vector<8x1xf32>
      %52 = arith.subf %41, %43 : vector<8x1xf32>
      %53 = arith.subf %47, %51 : vector<8x1xf32>
      %54 = arith.mulf %52, %52 : vector<8x1xf32>
      %55 = arith.mulf %53, %53 : vector<8x1xf32>
      %56 = arith.addf %54, %55 : vector<8x1xf32>
      %c0_29 = arith.constant 0 : index
      %c0_30 = arith.constant 0 : index
      %57 = vector.load %arg4[%c0_29, %c0_30] : memref<8x1xf32, #tpu.memory_space<vmem>>, vector<8x1xf32>
      tpu.vector_store %arg4[%c0_29, %c0_30], %56 {strides = array<i32>} : memref<8x1xf32, #tpu.memory_space<vmem>>, vector<8x1xf32>,
    } else {
    }
    return
  }
  func.func @transform_0(%arg0: i32, %arg1: i32) -> (i32, i32) {
    %c0_i32 = arith.constant 0 : i32
    return %arg0, %arg1 : i32, i32
  }
  func.func @transform_1(%arg0: i32, %arg1: i32) -> (i32, i32) {
    %c0_i32 = arith.constant 0 : i32
    return %arg0, %arg1 : i32, i32
  }
  func.func @transform_2(%arg0: i32, %arg1: i32) -> (i32, i32) {
    %c0_i32 = arith.constant 0 : i32
    %c0_i32_0 = arith.constant 0 : i32
    return %arg0, %c0_i32 : i32, i32
  }
}

</mosaic_0001>

<bundles_post_ra>
// kernel: tpu_custom_call.1
= control target key start
LH: loop header
LB: loop body
LE: loop exit
PB: predicated region body
PF: predicated region fallthrough
CT: control target
= control target key end

     0   :  { %7 = vsyncpa [#allocation7], 0  ;;  %s171_s0 = inlined_call_operand.hbm [shape: f32[8,256], index: 0, kind: input, shape index: {}]   ;;  %s172_s1 = inlined_call_operand.hbm [shape: f32[8,256], index: 1, kind: input, shape index: {}]   ;;  %s173_s2 = inlined_call_operand.vmem [shape: f32[8,1], index: 2, kind: output, shape index: {}]  }
   0x1   :  { %8 = vsyncpa [#allocation9], 0  ;;  %s145_s9 = smov [#allocation6]   ;;  %s146_s11 = smov [#allocation8]  }
   0x2   :  { %s15_s10 = sshll.u32 %s145_s9, 4  ;;  %s25_s12 = sshll.u32 %s146_s11, 4  ;;  %s16_s10 = int_to_ptr.vmem [resolvable:$true] %s15_s10  ;;  %s26_s12 = int_to_ptr.vmem [resolvable:$true] %s25_s12 }
   0x3   :  { %s109_s13 = scalar_lea.vmem %s16_s10, 256  ;;  %p114_p1 = scmp.lt.s32.totalorder %s16_s10, %s16_s10 }
   0x4   :  { %p110_p0 = scmp.ne.s32.totalorder %s16_s10, %s109_s13  ;;  %p115_p2 = scmp.lt.s32.totalorder %s109_s13, %s109_s13 }
   0x6   :  { %p116_p3 = por %p115_p2, %p114_p1 }
   0x8   :  { %p117_p4 = pnand %p116_p3, %p110_p0 }
   0xa   :  { %120 = shalt.err (!%p117_p4)
}
   0xb   :  { %18 = dma.hbm_to_vmem [thread:$0]  %s171_s0, 256, %s16_s10, [#allocation7]  }
   0xc   :  { %s129_s16 = scalar_lea.vmem %s26_s12, 256  ;;  %p134_p6 = scmp.lt.s32.totalorder %s26_s12, %s26_s12 }
   0xd   :  { %p130_p5 = scmp.ne.s32.totalorder %s26_s12, %s129_s16  ;;  %p135_p7 = scmp.lt.s32.totalorder %s129_s16, %s129_s16 }
   0xf   :  { %p136_p8 = por %p135_p7, %p134_p6 }
  0x11   :  { %p137_p9 = pnand %p136_p8, %p130_p5 }
  0x13   :  { %140 = shalt.err (!%p137_p9)
}
  0x14   :  { %28 = dma.hbm_to_vmem [thread:$0]  %s172_s1, 256, %s26_s12, [#allocation9]  }
  0x15   :  { %141 = dma.done.wait [#allocation7], 256  }
  0x16   :  { %142 = vsyncadd [#allocation7], 4294967040 }
  0x17   :  { %143 = dma.done.wait [#allocation9], 256  }
  0x18   :  { %144 = vsyncadd [#allocation9], 4294967040  ;;  %v43_v0 = vld [vmem:[#allocation6] sm:$0xff]  ;;  %v44_v1 = vld [vmem:[#allocation6 + $0x8] sm:$0xff]  ;;  %vm91_vm0 = vcmask 7168  }
  0x19   :  { %v45_v2 = vld [vmem:[#allocation8] sm:$0xff]  ;;  %v57_v3 = vadd.f32 %v44_v1, %v43_v0  ;;  %v52_v4 = vmul.f32 %v43_v0, %v43_v0  ;;  %v58_v5 = vmul.f32 %v44_v1, %v44_v1  ;;  %v46_v6 = vld [vmem:[#allocation8 + $0x8] sm:$0xff] }
  0x1a   :  { %v55_v7 = vmul.f32 %v45_v2, %v45_v2  ;;  %v61_v8 = vmul.f32 %v46_v6, %v46_v6  ;;  %v60_v10 = vadd.f32 %v46_v6, %v45_v2 }
  0x1b   :  { %70 = vadd.xlane.f32.xlu0 %v57_v3  ;;  %v59_v9 = vadd.f32 %v58_v5, %v52_v4 }
  0x1c   :  { %v62_v11 = vadd.f32 %v61_v8, %v55_v7 }
  0x1d   :  { %72 = vadd.xlane.f32.xlu1 %v59_v9 }
  0x1f   :  { %74 = vadd.xlane.f32.xlu0 %v60_v10 }
  0x21   :  { %76 = vadd.xlane.f32.xlu1 %v62_v11 }
  0xa4   :  { %v71_v12 = vpop.xlane.xlu0 %70 }
  0xa5   :  { %v78_v13 = vmul.f32 0.00390625, %v71_v12 }
  0xa6   :  { %v73_v14 = vpop.xlane.xlu1 %72 }
  0xa7   :  { %v81_v16 = vmul.f32 %v78_v13, %v78_v13  ;;  %v80_v17 = vmul.f32 0.00390625, %v73_v14 }
  0xa8   :  { %v75_v15 = vpop.xlane.xlu0 %74 }
  0xa9   :  { %v79_v18 = vmul.f32 0.00390625, %v75_v15  ;;  %v82_v22 = vsub.f32 %v80_v17, %v81_v16 }
  0xaa   :  { %v77_v19 = vpop.xlane.xlu1 %76 }
  0xab   :  { %v84_v20 = vmul.f32 %v79_v18, %v79_v18  ;;  %v83_v21 = vmul.f32 0.00390625, %v77_v19  ;;  %v86_v23 = vsub.f32 %v78_v13, %v79_v18 }
  0xad   :  { %v85_v24 = vsub.f32 %v83_v21, %v84_v20  ;;  %v88_v26 = vmul.f32 %v86_v23, %v86_v23 }
  0xaf   :  { %v87_v25 = vsub.f32 %v82_v22, %v85_v24 }
  0xb1   :  { %v89_v27 = vmul.f32 %v87_v25, %v87_v25 }
  0xb3   :  { %v90_v28 = vadd.f32 %v89_v27, %v88_v26 }
  0xb5   :  { %92 = vst.msk [vmem:[%s173_s2] sm:$0xff] %vm91_vm0, %v90_v28 }
  0xb6   :  { %97 = vsyncpa [#allocation7], 1 }
  0xb7   :  { %98 = vsyncpa [#allocation9], 1 }

</bundles_post_ra>
